<compile_context>
chip_gen: v7x
topology: tpu7x:2x2x1
jax: 0.10.0
libtpu: 0.0.40
codegen_flags: <defaults>
</compile_context>

<pallas_src>
import functools

import jax
import jax.numpy as jnp
from jax.experimental import pallas as pl
from jax.experimental.pallas import tpu as pltpu


def actor_kernel(s_ref, wb1_ref, wb2_ref, wb3_ref, out_ref, *, a_dim):
    """Fused MLP forward for one batch tile.

    Each wbN slab is [in_dim + 1, out_dim]; its last row is the bias.
    Output lanes: [0, a_dim) = mean, [a_dim, 2*a_dim) = std, rest = padding.
    """
    x = s_ref[...]

    # fc1 + relu (bias = last row of slab)
    wb1 = wb1_ref[...]
    k1 = wb1.shape[0] - 1
    h = jnp.dot(x, wb1[:k1], preferred_element_type=jnp.float32) + wb1[k1:]
    h = jnp.maximum(h, 0.0)

    # fc2 + relu
    wb2 = wb2_ref[...]
    k2 = wb2.shape[0] - 1
    h = jnp.dot(h, wb2[:k2], preferred_element_type=jnp.float32) + wb2[k2:]
    h = jnp.maximum(h, 0.0)

    # Fused mean/std head (single matmul, lane-padded to 128 output columns).
    wb3 = wb3_ref[...]
    k3 = wb3.shape[0] - 1
    y = jnp.dot(h, wb3[:k3], preferred_element_type=jnp.float32) + wb3[k3:]

    # std lanes get exp(clip(.)); mean lanes pass through unchanged. Padding
    # lanes hold exp(0)=1 and are sliced off by the wrapper.
    col = jax.lax.broadcasted_iota(jnp.int32, y.shape, 1)
    std = jnp.exp(jnp.clip(y, -20.0, 2.0))
    out_ref[...] = jnp.where(col >= a_dim, std, y).astype(out_ref.dtype)


def pack_actor_params(params, lane_pad=128):
    """One-time param packing: fold each bias into its weight slab (last row),
    fuse the two heads column-wise, and lane-pad the head to `lane_pad` cols."""
    w3 = jnp.concatenate([params["w3m"], params["w3s"]], axis=1)   # [h, 2a]
    b3 = jnp.concatenate([params["b3m"], params["b3s"]], axis=1)   # [1, 2a]
    n_out = w3.shape[1]
    n_pad = max(lane_pad, pl.cdiv(n_out, lane_pad) * lane_pad)
    wb3 = jnp.concatenate([w3, b3], axis=0)                        # [h+1, 2a]
    wb3 = jnp.pad(wb3, ((0, 0), (0, n_pad - n_out)))               # [h+1, n_pad]
    return {
        "wb1": jnp.concatenate([params["w1"], params["b1"]], axis=0),  # [s+1, h]
        "wb2": jnp.concatenate([params["w2"], params["b2"]], axis=0),  # [h+1, h]
        "wb3": wb3,
    }


def actor_forward(state, packed, *, a_dim, block_b=512):
    """Actor MLP forward. Small batches run as one block; large batches are
    tiled over the batch axis with VMEM-resident weights."""
    B, s_dim = state.shape
    wb1, wb2, wb3 = packed["wb1"], packed["wb2"], packed["wb3"]
    n_pad = wb3.shape[1]

    if B > block_b:
        tb = block_b                       # multiple of 8 -> legal sublane tile
        b_pad = pl.cdiv(B, tb) * tb
    else:
        tb = B                             # full-extent block, any B is legal
        b_pad = B
    x = state if b_pad == B else jnp.pad(state, ((0, b_pad - B), (0, 0)))
    grid = (b_pad // tb,)

    kernel = functools.partial(actor_kernel, a_dim=a_dim)
    out = pl.pallas_call(
        kernel,
        out_shape=jax.ShapeDtypeStruct((b_pad, n_pad), jnp.float32),
        grid_spec=pltpu.PrefetchScalarGridSpec(
            num_scalar_prefetch=0,
            grid=grid,
            in_specs=[
                pl.BlockSpec((tb, s_dim), lambda i: (i, 0)),
                pl.BlockSpec(wb1.shape, lambda i: (0, 0)),   # resident weights
                pl.BlockSpec(wb2.shape, lambda i: (0, 0)),
                pl.BlockSpec(wb3.shape, lambda i: (0, 0)),
            ],
            out_specs=pl.BlockSpec((tb, n_pad), lambda i: (i, 0)),
        ),
        compiler_params=pltpu.CompilerParams(
            dimension_semantics=("parallel",)),
    )(x, wb1, wb2, wb3)

    mean = out[:B, :a_dim]
    std = out[:B, a_dim:2 * a_dim]
    return mean, std


def init_actor_params(key, s_dim, a_dim, h_dim, init_w=0.003):
    """PyTorch-style init (uniform fan-in for fc1/fc2, uniform(-init_w, init_w)
    for both heads, as in Actor.init_weights). Weights stored [in, out]."""
    ks = jax.random.split(key, 8)

    def lin_init(kw, kb, fan_in, fan_out):
        bound = 1.0 / jnp.sqrt(jnp.float32(fan_in))
        w = jax.random.uniform(kw, (fan_in, fan_out), jnp.float32, -bound, bound)
        b = jax.random.uniform(kb, (1, fan_out), jnp.float32, -bound, bound)
        return w, b

    w1, b1 = lin_init(ks[0], ks[1], s_dim, h_dim)
    w2, b2 = lin_init(ks[2], ks[3], h_dim, h_dim)
    w3m = jax.random.uniform(ks[4], (h_dim, a_dim), jnp.float32, -init_w, init_w)
    b3m = jax.random.uniform(ks[5], (1, a_dim), jnp.float32, -init_w, init_w)
    w3s = jax.random.uniform(ks[6], (h_dim, a_dim), jnp.float32, -init_w, init_w)
    b3s = jax.random.uniform(ks[7], (1, a_dim), jnp.float32, -init_w, init_w)

    return {"w1": w1, "b1": b1, "w2": w2, "b2": b2,
            "w3m": w3m, "b3m": b3m, "w3s": w3s, "b3s": b3s}


def actor_forward_ref(state, p):
    """Pure-JAX reference for correctness checking."""
    h = jnp.maximum(state @ p["w1"] + p["b1"], 0.0)
    h = jnp.maximum(h @ p["w2"] + p["b2"], 0.0)
    mean = h @ p["w3m"] + p["b3m"]
    std = jnp.exp(jnp.clip(h @ p["w3s"] + p["b3s"], -20.0, 2.0))
    return mean, std


# TODO(synk): get_policy_logprob (tanh-Gaussian sampling) is not fused into the
# kernel; only the Module's forward() is implemented here.

if __name__ == "__main__":
    # Pendulum-v1: s_dim=3, a_dim=1, h_dim=32.
    s_dim, a_dim, h_dim = 3, 1, 32

    key = jax.random.PRNGKey(0)
    k_params, k_small, k_big = jax.random.split(key, 3)
    params = init_actor_params(k_params, s_dim, a_dim, h_dim)
    packed = pack_actor_params(params)

    fwd = jax.jit(functools.partial(actor_forward, a_dim=a_dim))

    # Acting path: tiny batch, single full-extent block.
    state_small = jax.random.normal(k_small, (2, s_dim), jnp.float32)
    # Training path: larger batch, batch-parallel grid (2 tiles of 512).
    state_big = jax.random.normal(k_big, (1024, s_dim), jnp.float32)

    for st in (state_small, state_big):
        mean, std = fwd(st, packed)
        jax.block_until_ready((mean, std))
        mean_ref, std_ref = actor_forward_ref(st, params)
        assert mean.shape == (st.shape[0], a_dim)
        assert std.shape == (st.shape[0], a_dim)
        assert jnp.allclose(mean, mean_ref, atol=1e-5, rtol=1e-5)
        assert jnp.allclose(std, std_ref, atol=1e-5, rtol=1e-5)
        assert bool(jnp.all(std > 0.0))

    print("KERNEL_OK")
</pallas_src>

<mosaic_0001>
module attributes {stable_mosaic.version = 11 : i64} {
  func.func @actor_kernel(%arg0: i32, %arg1: memref<2x3xf32, #tpu.memory_space<vmem>>, %arg2: memref<4x32xf32, #tpu.memory_space<vmem>>, %arg3: memref<33x32xf32, #tpu.memory_space<vmem>>, %arg4: memref<33x128xf32, #tpu.memory_space<vmem>>, %arg5: memref<2x128xf32, #tpu.memory_space<vmem>>) attributes {dimension_semantics = [#tpu.dimension_semantics<parallel>], iteration_bounds = array<i64: 1>, scalar_prefetch = 0 : i64, scratch_operands = 0 : i64, tpu.core_type = #tpu.core_type<tc>, window_params = [{transform_indices = @transform_0, window_bounds = array<i64: 2, 3>}, {pipeline_mode = #tpu.pipeline_mode<synchronous>, transform_indices = @transform_1, window_bounds = array<i64: 4, 32>}, {pipeline_mode = #tpu.pipeline_mode<synchronous>, transform_indices = @transform_2, window_bounds = array<i64: 33, 32>}, {pipeline_mode = #tpu.pipeline_mode<synchronous>, transform_indices = @transform_3, window_bounds = array<i64: 33, 128>}, {transform_indices = @transform_4, window_bounds = array<i64: 2, 128>}]} {
    %c0 = arith.constant 0 : index
    %c0_0 = arith.constant 0 : index
    %0 = vector.load %arg1[%c0, %c0_0] : memref<2x3xf32, #tpu.memory_space<vmem>>, vector<2x3xf32>
    %c0_1 = arith.constant 0 : index
    %c0_2 = arith.constant 0 : index
    %1 = vector.load %arg2[%c0_1, %c0_2] : memref<4x32xf32, #tpu.memory_space<vmem>>, vector<4x32xf32>
    %2 = vector.extract_strided_slice %1 {offsets = [0, 0], sizes = [3, 32], strides = [1, 1]} : vector<4x32xf32> to vector<3x32xf32>
    %cst = arith.constant dense<0.000000e+00> : vector<2x32xf32>
    %3 = tpu.matmul %0, %2, %cst {dimension_numbers = #tpu.dot_dimension_numbers<[1], [0], [0], [1], [0, 0, 1, 1], [], []>} : vector<2x3xf32>, vector<3x32xf32>, vector<2x32xf32> -> vector<2x32xf32>
    %4 = vector.extract_strided_slice %1 {offsets = [3, 0], sizes = [1, 32], strides = [1, 1]} : vector<4x32xf32> to vector<1x32xf32>
    %5 = vector.broadcast %4 : vector<1x32xf32> to vector<2x32xf32>
    %6 = arith.addf %3, %5 : vector<2x32xf32>
    %cst_3 = arith.constant 0.000000e+00 : f32
    %7 = vector.broadcast %cst_3 : f32 to vector<2x32xf32>
    %8 = arith.maximumf %6, %7 : vector<2x32xf32>
    %c0_4 = arith.constant 0 : index
    %c0_5 = arith.constant 0 : index
    %9 = vector.load %arg3[%c0_4, %c0_5] : memref<33x32xf32, #tpu.memory_space<vmem>>, vector<33x32xf32>
    %10 = vector.extract_strided_slice %9 {offsets = [0, 0], sizes = [32, 32], strides = [1, 1]} : vector<33x32xf32> to vector<32x32xf32>
    %cst_6 = arith.constant dense<0.000000e+00> : vector<2x32xf32>
    %11 = tpu.matmul %8, %10, %cst_6 {dimension_numbers = #tpu.dot_dimension_numbers<[1], [0], [0], [1], [0, 0, 1, 1], [], []>} : vector<2x32xf32>, vector<32x32xf32>, vector<2x32xf32> -> vector<2x32xf32>
    %12 = vector.extract_strided_slice %9 {offsets = [32, 0], sizes = [1, 32], strides = [1, 1]} : vector<33x32xf32> to vector<1x32xf32>
    %13 = vector.broadcast %12 : vector<1x32xf32> to vector<2x32xf32>
    %14 = arith.addf %11, %13 : vector<2x32xf32>
    %cst_7 = arith.constant 0.000000e+00 : f32
    %15 = vector.broadcast %cst_7 : f32 to vector<2x32xf32>
    %16 = arith.maximumf %14, %15 : vector<2x32xf32>
    %c0_8 = arith.constant 0 : index
    %c0_9 = arith.constant 0 : index
    %17 = vector.load %arg4[%c0_8, %c0_9] : memref<33x128xf32, #tpu.memory_space<vmem>>, vector<33x128xf32>
    %18 = vector.extract_strided_slice %17 {offsets = [0, 0], sizes = [32, 128], strides = [1, 1]} : vector<33x128xf32> to vector<32x128xf32>
    %cst_10 = arith.constant dense<0.000000e+00> : vector<2x128xf32>
    %19 = tpu.matmul %16, %18, %cst_10 {dimension_numbers = #tpu.dot_dimension_numbers<[1], [0], [0], [1], [0, 0, 1, 1], [], []>} : vector<2x32xf32>, vector<32x128xf32>, vector<2x128xf32> -> vector<2x128xf32>
    %20 = vector.extract_strided_slice %17 {offsets = [32, 0], sizes = [1, 128], strides = [1, 1]} : vector<33x128xf32> to vector<1x128xf32>
    %21 = vector.broadcast %20 : vector<1x128xf32> to vector<2x128xf32>
    %22 = arith.addf %19, %21 : vector<2x128xf32>
    %23 = tpu.iota {dimensions = array<i32: 1>} : vector<2x128xi32>
    %cst_11 = arith.constant -2.000000e+01 : f32
    %cst_12 = arith.constant 2.000000e+00 : f32
    %24 = vector.broadcast %cst_11 : f32 to vector<2x128xf32>
    %25 = arith.maximumf %24, %22 : vector<2x128xf32>
    %26 = vector.broadcast %cst_12 : f32 to vector<2x128xf32>
    %27 = arith.minimumf %26, %25 : vector<2x128xf32>
    %28 = math.exp %27 : vector<2x128xf32>
    %c1_i32 = arith.constant 1 : i32
    %29 = vector.broadcast %c1_i32 : i32 to vector<2x128xi32>
    %30 = arith.cmpi sge, %23, %29 : vector<2x128xi32>
    %31 = arith.select %30, %28, %22 : vector<2x128xi1>, vector<2x128xf32>
    %c0_13 = arith.constant 0 : index
    %c0_14 = arith.constant 0 : index
    %32 = vector.load %arg5[%c0_13, %c0_14] : memref<2x128xf32, #tpu.memory_space<vmem>>, vector<2x128xf32>
    tpu.vector_store %arg5[%c0_13, %c0_14], %31 {strides = array<i32>} : memref<2x128xf32, #tpu.memory_space<vmem>>, vector<2x128xf32>,
    return
  }
  func.func @transform_0(%arg0: i32) -> (i32, i32) {
    %c0_i32 = arith.constant 0 : i32
    %c0_i32_0 = arith.constant 0 : i32
    return %arg0, %c0_i32 : i32, i32
  }
  func.func @transform_1(%arg0: i32) -> (i32, i32) {
    %c0_i32 = arith.constant 0 : i32
    %c0_i32_0 = arith.constant 0 : i32
    %c0_i32_1 = arith.constant 0 : i32
    return %c0_i32, %c0_i32_0 : i32, i32
  }
  func.func @transform_2(%arg0: i32) -> (i32, i32) {
    %c0_i32 = arith.constant 0 : i32
    %c0_i32_0 = arith.constant 0 : i32
    %c0_i32_1 = arith.constant 0 : i32
    return %c0_i32, %c0_i32_0 : i32, i32
  }
  func.func @transform_3(%arg0: i32) -> (i32, i32) {
    %c0_i32 = arith.constant 0 : i32
    %c0_i32_0 = arith.constant 0 : i32
    %c0_i32_1 = arith.constant 0 : i32
    return %c0_i32, %c0_i32_0 : i32, i32
  }
  func.func @transform_4(%arg0: i32) -> (i32, i32) {
    %c0_i32 = arith.constant 0 : i32
    %c0_i32_0 = arith.constant 0 : i32
    return %arg0, %c0_i32 : i32, i32
  }
}

</mosaic_0001>

<bundles_post_ra>
// kernel: actor_forward.1
= control target key start
LH: loop header
LB: loop body
LE: loop exit
PB: predicated region body
PF: predicated region fallthrough
CT: control target
= control target key end

     0   :  { %vm27_vm0 = vcmask 1042432   ;;  %vm23_vm1 = vcmask 23552   ;;  %v343_v0 = vmov 0.0   ;;  %vm344_vm2 = vmmov 0   ;;  %s410_s1 = inlined_call_operand.vmem [shape: f32[4,32], index: 1, kind: input, shape index: {}]   ;;  %s411_s0 = inlined_call_operand.vmem [shape: f32[2,3], index: 0, kind: input, shape index: {}]   ;;  %s412_s2 = inlined_call_operand.vmem [shape: f32[33,32], index: 2, kind: input, shape index: {}]   ;;  %s413_s3 = inlined_call_operand.vmem [shape: f32[33,128], index: 3, kind: input, shape index: {}]   ;;  %s414_s4 = inlined_call_operand.vmem [shape: f32[2,128], index: 4, kind: output, shape index: {}]  }
   0x1   :  { %299 = vmatprep.subr.mxu0 %v343_v0  ;;  %v18_v1 = vld [vmem:[%s410_s1] sm:$0xf]  ;;  %301 = vmatprep.mubr.msk.f32.mxu0 %vm344_vm2, %v343_v0  ;;  %v345_v4 = vmov 0.0|0.0   ;;  %v103_v5 = vld [vmem:[%s412_s2 + $0x8] sm:$0xff]  ;;  %v104_v7 = vld [vmem:[%s412_s2 + $0x10] sm:$0xff]  ;;  %v19_v13 = vlaneseq  ;;  %vm111_vm3 = vcmask 261120  }
   0x2   :  { %v17_v2 = vld [vmem:[%s411_s0] sm:$0x3]  ;;  %300 = vmatpush3.msk.msra.mxu0 %vm27_vm0, %v18_v1  ;;  %326 = vmatprep.subr.bf16.mxu1 %v345_v4  ;;  %v105_v8 = vld [vmem:[%s412_s2 + $0x18] sm:$0xff]  ;;  %v187_v11 = vld [vmem:[%s413_s3 + $0x8] sm:$0xff] }
   0x3   :  { %v102_v3 = vld [vmem:[%s412_s2] sm:$0xff]  ;;  %302 = vmatmul.mubr.msk.f32.vlgmr.msra.gmra.mrb[0].mxu0 %vm23_vm1, %v17_v2  ;;  %312 = vmatprep.mubr.msk.f32.mxu1 %vm344_vm2, %v343_v0  ;;  %v330_v9 = vpack.c.bf16 %v105_v8, %v104_v7  ;;  %v20_v14 = vshrl.u32 %v19_v13, 7  ;;  %v188_v21 = vld [vmem:[%s413_s3 + $0x10] sm:$0xff]  ;;  %v189_v22 = vld [vmem:[%s413_s3 + $0x18] sm:$0xff]  ;;  %v269_v36 = vand.u32 127, %v19_v13 }
   0x4   :  { %v327_v6 = vpack.c.bf16 %v103_v5, %v102_v3  ;;  %332 = vmatprep.subr.bf16.mxu0 %v345_v4  ;;  %323 = vmatprep.mubr.msk.f32.mxu0 %vm344_vm2, %v343_v0  ;;  %v186_v10 = vld [vmem:[%s413_s3] sm:$0xff]  ;;  %v336_v23 = vpack.c.bf16 %v189_v22, %v188_v21 }
   0x5   :  { %v333_v12 = vpack.c.bf16 %v187_v11, %v186_v10  ;;  %v21_v15 = vsub.s32 3, %v20_v14  ;;  %v283_v24 = vld [vmem:[%s412_s2 + $0x20] ss:$0 sm:$0xff]  ;;  %vm274_vm4 = vcmp.ge.s32.totalorder %v269_v36, 1 }
   0x6   :  { %328 = vmatpush3.bf16.msra.mxu1 %v327_v6  ;;  %v285_v29 = vld [vmem:[%s413_s3 + $0x20] ss:$0 sm:$0xff] }
   0x7   :  { %329 = vmatprep.subr.bf16.mxu1 %v345_v4  ;;  %334 = vmatpush3.bf16.msra.mxu0 %v333_v12  ;;  %v22_v16 = vrot.slane %v18_v1, %v21_v15 }
   0x8   :  { %335 = vmatprep.subr.bf16.mxu0 %v345_v4 }
   0xa   :  { %331 = vmatpush3.bf16.msra.mxu1 %v330_v9 }
   0xb   :  { %337 = vmatpush3.bf16.msra.mxu0 %v336_v23 }
  0xd6   :  { %v97_v17 = vpop.f32.mrb[0].mxu0 }
  0xd7   :  { %v98_v18 = vadd.f32 %v97_v17, %v22_v16  ;;  %v303_v19 = vpop.f32.mrb[1].mxu0 }
  0xd9   :  { %v101_v20 = vmax.f32 %v98_v18, 0.0 }
  0xdb   :  { %313 = vmatmul.mubr.msk.f32.vlgmr.msra.gmra.mrb[0].mxu1 %vm111_vm3, %v101_v20 }
 0x1ae   :  { %v181_v25 = vpop.f32.mrb[0].mxu1 }
 0x1af   :  { %v182_v26 = vadd.f32 %v283_v24, %v181_v25  ;;  %v314_v27 = vpop.f32.mrb[1].mxu1 }
 0x1b1   :  { %v185_v28 = vmax.f32 %v182_v26, 0.0 }
 0x1b3   :  { %324 = vmatmul.mubr.msk.f32.vlgmr.msra.gmra.mrb[2].mxu0 %vm111_vm3, %v185_v28 }
 0x286   :  { %v264_v30 = vpop.f32.mrb[2].mxu0 }
 0x287   :  { %v265_v31 = vadd.f32 %v285_v29, %v264_v30  ;;  %v325_v32 = vpop.f32.mrb[3].mxu0 }
 0x289   :  { %v270_v33 = vmax.f32 %v265_v31, -20.0 }
 0x28b   :  { %v271_v34 = vmin.f32 %v270_v33, 2.0 }
 0x28d   :  { %v272_v35 = vmul.f32 1.442695, %v271_v34 }
 0x28f   :  { %341 = vpow2.f32 %v272_v35 }
 0x299   :  { %v342_v37 = vpop.eup %341 }
 0x29a   :  { %v275_v38 = vsel %vm274_vm4, %v342_v37, %v265_v31 }
 0x29b   :  { %276 = vst [vmem:[%s414_s4] sm:$0x3] %v275_v38 }

</bundles_post_ra>
